<compile_context>
chip_gen: v6e
topology: v6e:2x2x1
jax: 0.10.0
libtpu: 0.0.40
codegen_flags: <defaults>
</compile_context>

<pallas_src>
import functools
import math

import jax
import jax.numpy as jnp
from jax.experimental import pallas as pl
from jax.experimental.pallas import tpu as pltpu


def _round_up(v: int, m: int) -> int:
    return (v + m - 1) // m * m


def _gelu_exact(x):
    # PyTorch nn.GELU() default = exact erf formulation.
    return 0.5 * x * (1.0 + jax.lax.erf(x * (1.0 / math.sqrt(2.0))))


def _projector_loss_kernel(
    x_ref,        # [TB, D]        latent_reps tile (f32)
    y_ref,        # [TB, O]        target tile (f32)
    gamma_ref,    # [1, D]         LayerNorm weight (f32)
    beta_ref,     # [1, D]         LayerNorm bias (f32)
    w_ref,        # [L, D, D]      hidden Linear weights (bf16)
    b_ref,        # [L, 1, D]      hidden Linear biases (f32)
    wout_ref,     # [1, D] (O==1)  or [D, O]  output Linear weight (f32)
    bout_ref,     # [1, O]         output Linear bias (f32)
    preds_ref,    # [TB, O]        out: prediction tile
    loss_ref,     # [1, 8, 128]    out: per-tile sum-of-squared-error (replicated)
    *,
    num_layers: int,
    o_dim: int,
    batch_size: int,
    block_b: int,
    eps: float,
):
    x = x_ref[...].astype(jnp.float32)

    # ---- LayerNorm over the feature axis (f32) ----
    mean = jnp.mean(x, axis=-1, keepdims=True)
    centered = x - mean
    var = jnp.mean(centered * centered, axis=-1, keepdims=True)
    h = centered * jax.lax.rsqrt(var + eps)
    h = h * gamma_ref[...] + beta_ref[...]

    # ---- [Linear(D,D) + GELU] x num_layers: bf16 MXU matmuls, f32 accumulate ----
    for l in range(num_layers):
        w = w_ref[l]                    # [D, D] (bf16)
        b = b_ref[l]                    # [1, D] (f32)
        h = jnp.dot(h.astype(w.dtype), w, preferred_element_type=jnp.float32) + b
        h = _gelu_exact(h)

    # ---- final Linear(D, O) ----
    if o_dim == 1:
        # O == 1: the MXU would use one result column of 128/256 -> do the dot
        # product on the VPU as broadcast-multiply + lane reduction instead.
        out = jnp.sum(h * wout_ref[...], axis=-1, keepdims=True) + bout_ref[...]
    else:
        out = jnp.dot(h, wout_ref[...], preferred_element_type=jnp.float32) + bout_ref[...]
    preds_ref[...] = out

    # ---- criterion: per-tile masked sum of squared error (mean in wrapper) ----
    row = (jax.lax.broadcasted_iota(jnp.int32, (block_b, 1), 0)
           + pl.program_id(0) * block_b)
    valid = row < batch_size                       # mask out zero-padded rows
    diff = out - y_ref[...].astype(jnp.float32)
    sq = jnp.where(valid, diff * diff, 0.0)
    partial = jnp.sum(sq)
    loss_ref[...] = jnp.zeros(loss_ref.shape, jnp.float32) + partial


def projector_forward_with_loss(latent_reps, y, params, *, eps=1e-5,
                                block_b=None, matmul_dtype=jnp.bfloat16):
    """Projector + MSE criterion in a single batch-tiled Pallas kernel.

    latent_reps: [B, D] float32
    y:           [B] or [B, O] float32
    params: dict with ln_gamma [D], ln_beta [D], w [L, D, D], b [L, D],
            w_out [D, O], b_out [O]
    Returns (loss_scalar, preds_squeezed).
    """
    B, D = latent_reps.shape
    L = params["w"].shape[0]
    O = params["w_out"].shape[1]

    if block_b is None:
        block_b = 256 if B >= 256 else _round_up(B, 8)
    block_b = max(8, _round_up(min(block_b, _round_up(B, 8)), 8))
    B_pad = _round_up(B, block_b)
    num_tiles = B_pad // block_b

    x = latent_reps.astype(jnp.float32)
    y2 = y.reshape(B, O).astype(jnp.float32)
    if B_pad != B:
        pad = B_pad - B
        x = jnp.pad(x, ((0, pad), (0, 0)))
        y2 = jnp.pad(y2, ((0, pad), (0, 0)))

    gamma = params["ln_gamma"].reshape(1, D).astype(jnp.float32)
    beta = params["ln_beta"].reshape(1, D).astype(jnp.float32)
    # TODO(synk): for very large L*D*D (v7x has only 64 MiB VMEM) stream the
    #             layers over an extra "arbitrary" grid axis instead of keeping
    #             the whole bf16 weight stack resident.
    w = params["w"].astype(matmul_dtype)                      # [L, D, D]
    b = params["b"].reshape(L, 1, D).astype(jnp.float32)      # [L, 1, D]
    if O == 1:
        w_out = params["w_out"].reshape(D, 1).T.astype(jnp.float32)   # [1, D]
        wout_spec = pl.BlockSpec((1, D), lambda i: (0, 0))
    else:
        w_out = params["w_out"].astype(jnp.float32)                   # [D, O]
        wout_spec = pl.BlockSpec((D, O), lambda i: (0, 0))
    b_out = params["b_out"].reshape(1, O).astype(jnp.float32)

    kernel = functools.partial(
        _projector_loss_kernel, num_layers=L, o_dim=O,
        batch_size=B, block_b=block_b, eps=eps)

    # VMEM budget: resident weights + double-buffered activation tiles.
    w_itemsize = jnp.dtype(matmul_dtype).itemsize
    weight_bytes = L * D * D * w_itemsize + (L * D + D * O + O + 2 * D) * 4
    tile_bytes = block_b * D * 4 + 2 * block_b * O * 4 + 8 * 128 * 4
    vmem_limit = int(min(max(2 * (weight_bytes + tile_bytes) + (4 << 20), 8 << 20),
                         64 << 20))

    cost = pl.CostEstimate(
        flops=2 * B_pad * D * D * L + 2 * B_pad * D * O,
        transcendentals=B_pad * D * L,
        bytes_accessed=((x.size + y2.size) * 4
                        + L * D * D * w_itemsize
                        + (L * D + 2 * D + D * O + O) * 4
                        + B_pad * O * 4
                        + num_tiles * 8 * 128 * 4),
    )

    preds_pad, loss_parts = pl.pallas_call(
        kernel,
        grid=(num_tiles,),
        in_specs=[
            pl.BlockSpec((block_b, D), lambda i: (i, 0)),    # x tile
            pl.BlockSpec((block_b, O), lambda i: (i, 0)),    # y tile
            pl.BlockSpec((1, D), lambda i: (0, 0)),          # LN gamma (resident)
            pl.BlockSpec((1, D), lambda i: (0, 0)),          # LN beta  (resident)
            pl.BlockSpec((L, D, D), lambda i: (0, 0, 0)),    # hidden weights
            pl.BlockSpec((L, 1, D), lambda i: (0, 0, 0)),    # hidden biases
            wout_spec,                                       # output weight
            pl.BlockSpec((1, O), lambda i: (0, 0)),          # output bias
        ],
        out_specs=(
            pl.BlockSpec((block_b, O), lambda i: (i, 0)),    # preds tile
            pl.BlockSpec((1, 8, 128), lambda i: (i, 0, 0)),  # per-tile SSE
        ),
        out_shape=(
            jax.ShapeDtypeStruct((B_pad, O), jnp.float32),
            jax.ShapeDtypeStruct((num_tiles, 8, 128), jnp.float32),
        ),
        compiler_params=pltpu.CompilerParams(
            dimension_semantics=("parallel",),
            vmem_limit_bytes=vmem_limit,
        ),
        cost_estimate=cost,
    )(x, y2, gamma, beta, w, b, w_out, b_out)

    preds = preds_pad[:B]
    loss = jnp.sum(loss_parts[:, 0, 0]) / (B * O)
    return loss, jnp.squeeze(preds)


def init_params(key, input_dim, output_dim, num_layers):
    ks = jax.random.split(key, 2 * num_layers + 2)
    scale_h = 1.0 / math.sqrt(input_dim)
    w = jnp.stack(
        [
            jax.random.uniform(
                ks[i], (input_dim, input_dim), jnp.float32, -scale_h, scale_h
            )
            for i in range(num_layers)
        ]
    )
    b = jnp.stack(
        [
            jax.random.uniform(
                ks[num_layers + i], (input_dim,), jnp.float32, -scale_h, scale_h
            )
            for i in range(num_layers)
        ]
    )
    w_out = jax.random.uniform(
        ks[-2], (input_dim, output_dim), jnp.float32, -scale_h, scale_h
    )
    b_out = jax.random.uniform(
        ks[-1], (output_dim,), jnp.float32, -scale_h, scale_h
    )
    return dict(
        ln_gamma=jnp.ones((input_dim,), jnp.float32),
        ln_beta=jnp.zeros((input_dim,), jnp.float32),
        w=w,
        b=b,
        w_out=w_out,
        b_out=b_out,
    )


if __name__ == "__main__":
    D, O, L = 32, 1, 2  # input_dim, output_dim, num_layers

    key = jax.random.PRNGKey(0)
    k_x, k_y, k_p = jax.random.split(key, 3)
    params = init_params(k_p, D, O, L)

    # Pure-JAX reference of the projector + MSE path (f32 throughout).
    def ref_forward(x):
        mean = jnp.mean(x, axis=-1, keepdims=True)
        var = jnp.mean((x - mean) ** 2, axis=-1, keepdims=True)
        h = (x - mean) / jnp.sqrt(var + 1e-5)
        h = h * params["ln_gamma"] + params["ln_beta"]
        for l in range(L):
            h = h @ params["w"][l] + params["b"][l]
            h = jax.nn.gelu(h, approximate=False)
        return jnp.squeeze(h @ params["w_out"] + params["b_out"])

    # Case 1: batch is a single tile.  Case 2: batch not a multiple of 8 with a
    # small explicit tile -> multi-step grid + padded-row masking in the loss.
    for B, block_b in ((8, None), (20, 8)):
        kx, ky = jax.random.split(jax.random.fold_in(k_x, B))
        latent_reps = jax.random.normal(kx, (B, D), jnp.float32)
        y = jax.random.normal(ky, (B,), jnp.float32)

        loss, preds = projector_forward_with_loss(
            latent_reps, y, params, block_b=block_b)
        jax.block_until_ready((loss, preds))

        preds_ref = ref_forward(latent_reps)
        loss_ref = jnp.mean((preds_ref - y) ** 2)
        # Hidden matmuls use bf16 MXU operands -> allow small drift vs f32 ref.
        assert jnp.allclose(preds, preds_ref, atol=3e-2, rtol=3e-2), (B, block_b)
        assert jnp.allclose(loss, loss_ref, atol=3e-2, rtol=3e-2), (B, block_b)

    print("KERNEL_OK")
</pallas_src>

<mosaic_0001>
module attributes {stable_mosaic.version = 11 : i64} {
  func.func @_projector_loss_kernel(%arg0: i32, %arg1: memref<8x32xf32, #tpu.memory_space<vmem>>, %arg2: memref<8x1xf32, #tpu.memory_space<vmem>>, %arg3: memref<1x32xf32, #tpu.memory_space<vmem>>, %arg4: memref<1x32xf32, #tpu.memory_space<vmem>>, %arg5: memref<2x32x32xbf16, #tpu.memory_space<vmem>>, %arg6: memref<2x1x32xf32, #tpu.memory_space<vmem>>, %arg7: memref<1x32xf32, #tpu.memory_space<vmem>>, %arg8: memref<1x1xf32, #tpu.memory_space<vmem>>, %arg9: memref<8x1xf32, #tpu.memory_space<vmem>>, %arg10: memref<1x8x128xf32, #tpu.memory_space<vmem>>) attributes {dimension_semantics = [#tpu.dimension_semantics<parallel>], iteration_bounds = array<i64: 1>, scalar_prefetch = 0 : i64, scratch_operands = 0 : i64, tpu.core_type = #tpu.core_type<tc>, window_params = [{transform_indices = @transform_0, window_bounds = array<i64: 8, 32>}, {transform_indices = @transform_1, window_bounds = array<i64: 8, 1>}, {pipeline_mode = #tpu.pipeline_mode<synchronous>, transform_indices = @transform_2, window_bounds = array<i64: 1, 32>}, {pipeline_mode = #tpu.pipeline_mode<synchronous>, transform_indices = @transform_3, window_bounds = array<i64: 1, 32>}, {pipeline_mode = #tpu.pipeline_mode<synchronous>, transform_indices = @transform_4, window_bounds = array<i64: 2, 32, 32>}, {pipeline_mode = #tpu.pipeline_mode<synchronous>, transform_indices = @transform_5, window_bounds = array<i64: 2, 1, 32>}, {pipeline_mode = #tpu.pipeline_mode<synchronous>, transform_indices = @transform_6, window_bounds = array<i64: 1, 32>}, {pipeline_mode = #tpu.pipeline_mode<synchronous>, transform_indices = @transform_7, window_bounds = array<i64: 1, 1>}, {transform_indices = @transform_8, window_bounds = array<i64: 8, 1>}, {transform_indices = @transform_9, window_bounds = array<i64: 1, 8, 128>}]} {
    %c0 = arith.constant 0 : index
    %c0_0 = arith.constant 0 : index
    %0 = vector.load %arg1[%c0, %c0_0] : memref<8x32xf32, #tpu.memory_space<vmem>>, vector<8x32xf32>
    %cst = arith.constant dense<0.000000e+00> : vector<8xf32>
    %1 = vector.multi_reduction <add>, %0, %cst [1] : vector<8x32xf32> to vector<8xf32>
    %2 = vector.shape_cast %1 : vector<8xf32> to vector<8x1xf32>
    %cst_1 = arith.constant 3.200000e+01 : f32
    %3 = vector.broadcast %cst_1 : f32 to vector<8x1xf32>
    %4 = arith.divf %2, %3 : vector<8x1xf32>
    %5 = vector.broadcast %4 : vector<8x1xf32> to vector<8x32xf32>
    %6 = arith.subf %0, %5 : vector<8x32xf32>
    %7 = arith.mulf %6, %6 : vector<8x32xf32>
    %cst_2 = arith.constant dense<0.000000e+00> : vector<8xf32>
    %8 = vector.multi_reduction <add>, %7, %cst_2 [1] : vector<8x32xf32> to vector<8xf32>
    %9 = vector.shape_cast %8 : vector<8xf32> to vector<8x1xf32>
    %cst_3 = arith.constant 3.200000e+01 : f32
    %10 = vector.broadcast %cst_3 : f32 to vector<8x1xf32>
    %11 = arith.divf %9, %10 : vector<8x1xf32>
    %cst_4 = arith.constant 9.99999974E-6 : f32
    %12 = vector.broadcast %cst_4 : f32 to vector<8x1xf32>
    %13 = arith.addf %11, %12 : vector<8x1xf32>
    %14 = math.rsqrt %13 : vector<8x1xf32>
    %15 = vector.broadcast %14 : vector<8x1xf32> to vector<8x32xf32>
    %16 = arith.mulf %6, %15 : vector<8x32xf32>
    %c0_5 = arith.constant 0 : index
    %c0_6 = arith.constant 0 : index
    %17 = vector.load %arg3[%c0_5, %c0_6] : memref<1x32xf32, #tpu.memory_space<vmem>>, vector<1x32xf32>
    %18 = vector.broadcast %17 : vector<1x32xf32> to vector<8x32xf32>
    %19 = arith.mulf %16, %18 : vector<8x32xf32>
    %c0_7 = arith.constant 0 : index
    %c0_8 = arith.constant 0 : index
    %20 = vector.load %arg4[%c0_7, %c0_8] : memref<1x32xf32, #tpu.memory_space<vmem>>, vector<1x32xf32>
    %21 = vector.broadcast %20 : vector<1x32xf32> to vector<8x32xf32>
    %22 = arith.addf %19, %21 : vector<8x32xf32>
    %c0_9 = arith.constant 0 : index
    %c0_10 = arith.constant 0 : index
    %c0_11 = arith.constant 0 : index
    %23 = vector.load %arg5[%c0_9, %c0_10, %c0_11] : memref<2x32x32xbf16, #tpu.memory_space<vmem>>, vector<1x32x32xbf16>
    %24 = vector.shape_cast %23 : vector<1x32x32xbf16> to vector<32x32xbf16>
    %c0_12 = arith.constant 0 : index
    %c0_13 = arith.constant 0 : index
    %c0_14 = arith.constant 0 : index
    %25 = vector.load %arg6[%c0_12, %c0_13, %c0_14] : memref<2x1x32xf32, #tpu.memory_space<vmem>>, vector<1x1x32xf32>
    %26 = vector.shape_cast %25 : vector<1x1x32xf32> to vector<1x32xf32>
    %27 = arith.truncf %22 : vector<8x32xf32> to vector<8x32xbf16>
    %cst_15 = arith.constant dense<0.000000e+00> : vector<8x32xf32>
    %28 = tpu.matmul %27, %24, %cst_15 {dimension_numbers = #tpu.dot_dimension_numbers<[1], [0], [0], [1], [0, 0, 1, 1], [], []>} : vector<8x32xbf16>, vector<32x32xbf16>, vector<8x32xf32> -> vector<8x32xf32>
    %29 = vector.broadcast %26 : vector<1x32xf32> to vector<8x32xf32>
    %30 = arith.addf %28, %29 : vector<8x32xf32>
    %cst_16 = arith.constant 5.000000e-01 : f32
    %31 = vector.broadcast %cst_16 : f32 to vector<8x32xf32>
    %32 = arith.mulf %31, %30 : vector<8x32xf32>
    %cst_17 = arith.constant 0.707106769 : f32
    %33 = vector.broadcast %cst_17 : f32 to vector<8x32xf32>
    %34 = arith.mulf %30, %33 : vector<8x32xf32>
    %35 = math.erf %34 : vector<8x32xf32>
    %cst_18 = arith.constant 1.000000e+00 : f32
    %36 = vector.broadcast %cst_18 : f32 to vector<8x32xf32>
    %37 = arith.addf %36, %35 : vector<8x32xf32>
    %38 = arith.mulf %32, %37 : vector<8x32xf32>
    %c1 = arith.constant 1 : index
    %c0_19 = arith.constant 0 : index
    %c0_20 = arith.constant 0 : index
    %39 = vector.load %arg5[%c1, %c0_19, %c0_20] : memref<2x32x32xbf16, #tpu.memory_space<vmem>>, vector<1x32x32xbf16>
    %40 = vector.shape_cast %39 : vector<1x32x32xbf16> to vector<32x32xbf16>
    %c1_21 = arith.constant 1 : index
    %c0_22 = arith.constant 0 : index
    %c0_23 = arith.constant 0 : index
    %41 = vector.load %arg6[%c1_21, %c0_22, %c0_23] : memref<2x1x32xf32, #tpu.memory_space<vmem>>, vector<1x1x32xf32>
    %42 = vector.shape_cast %41 : vector<1x1x32xf32> to vector<1x32xf32>
    %43 = arith.truncf %38 : vector<8x32xf32> to vector<8x32xbf16>
    %cst_24 = arith.constant dense<0.000000e+00> : vector<8x32xf32>
    %44 = tpu.matmul %43, %40, %cst_24 {dimension_numbers = #tpu.dot_dimension_numbers<[1], [0], [0], [1], [0, 0, 1, 1], [], []>} : vector<8x32xbf16>, vector<32x32xbf16>, vector<8x32xf32> -> vector<8x32xf32>
    %45 = vector.broadcast %42 : vector<1x32xf32> to vector<8x32xf32>
    %46 = arith.addf %44, %45 : vector<8x32xf32>
    %cst_25 = arith.constant 5.000000e-01 : f32
    %47 = vector.broadcast %cst_25 : f32 to vector<8x32xf32>
    %48 = arith.mulf %47, %46 : vector<8x32xf32>
    %cst_26 = arith.constant 0.707106769 : f32
    %49 = vector.broadcast %cst_26 : f32 to vector<8x32xf32>
    %50 = arith.mulf %46, %49 : vector<8x32xf32>
    %51 = math.erf %50 : vector<8x32xf32>
    %cst_27 = arith.constant 1.000000e+00 : f32
    %52 = vector.broadcast %cst_27 : f32 to vector<8x32xf32>
    %53 = arith.addf %52, %51 : vector<8x32xf32>
    %54 = arith.mulf %48, %53 : vector<8x32xf32>
    %c0_28 = arith.constant 0 : index
    %c0_29 = arith.constant 0 : index
    %55 = vector.load %arg7[%c0_28, %c0_29] : memref<1x32xf32, #tpu.memory_space<vmem>>, vector<1x32xf32>
    %56 = vector.broadcast %55 : vector<1x32xf32> to vector<8x32xf32>
    %57 = arith.mulf %54, %56 : vector<8x32xf32>
    %cst_30 = arith.constant dense<0.000000e+00> : vector<8xf32>
    %58 = vector.multi_reduction <add>, %57, %cst_30 [1] : vector<8x32xf32> to vector<8xf32>
    %59 = vector.shape_cast %58 : vector<8xf32> to vector<8x1xf32>
    %c0_31 = arith.constant 0 : index
    %c0_32 = arith.constant 0 : index
    %60 = vector.load %arg8[%c0_31, %c0_32] : memref<1x1xf32, #tpu.memory_space<vmem>>, vector<1x1xf32>
    %61 = vector.broadcast %60 : vector<1x1xf32> to vector<8x1xf32>
    %62 = arith.addf %59, %61 : vector<8x1xf32>
    %c0_33 = arith.constant 0 : index
    %c0_34 = arith.constant 0 : index
    %63 = vector.load %arg9[%c0_33, %c0_34] : memref<8x1xf32, #tpu.memory_space<vmem>>, vector<8x1xf32>
    tpu.vector_store %arg9[%c0_33, %c0_34], %62 {strides = array<i32>} : memref<8x1xf32, #tpu.memory_space<vmem>>, vector<8x1xf32>,
    %64 = tpu.iota {dimensions = array<i32: 0>} : vector<8x1xi32>
    %c8_i32 = arith.constant 8 : i32
    %65 = arith.muli %arg0, %c8_i32 : i32
    %66 = vector.broadcast %65 : i32 to vector<8x1xi32>
    %67 = arith.addi %64, %66 : vector<8x1xi32>
    %c8_i32_35 = arith.constant 8 : i32
    %68 = vector.broadcast %c8_i32_35 : i32 to vector<8x1xi32>
    %69 = arith.cmpi slt, %67, %68 : vector<8x1xi32>
    %c0_36 = arith.constant 0 : index
    %c0_37 = arith.constant 0 : index
    %70 = vector.load %arg2[%c0_36, %c0_37] : memref<8x1xf32, #tpu.memory_space<vmem>>, vector<8x1xf32>
    %71 = arith.subf %62, %70 : vector<8x1xf32>
    %72 = arith.mulf %71, %71 : vector<8x1xf32>
    %cst_38 = arith.constant 0.000000e+00 : f32
    %73 = vector.broadcast %cst_38 : f32 to vector<8x1xf32>
    %74 = arith.select %69, %72, %73 : vector<8x1xi1>, vector<8x1xf32>
    %75 = vector.shape_cast %74 : vector<8x1xf32> to vector<1x8x1xf32>
    %cst_39 = arith.constant dense<0.000000e+00> : vector<1xf32>
    %76 = vector.multi_reduction <add>, %75, %cst_39 [1, 2] : vector<1x8x1xf32> to vector<1xf32>
    %77 = vector.shape_cast %76 : vector<1xf32> to vector<1x1x1xf32>
    %78 = vector.extract %77[0, 0, 0] : f32 from vector<1x1x1xf32>
    %cst_40 = arith.constant 0.000000e+00 : f32
    %79 = vector.broadcast %cst_40 : f32 to vector<1x8x128xf32>
    %80 = vector.broadcast %78 : f32 to vector<1x8x128xf32>
    %81 = arith.addf %79, %80 : vector<1x8x128xf32>
    %c0_41 = arith.constant 0 : index
    %c0_42 = arith.constant 0 : index
    %c0_43 = arith.constant 0 : index
    %82 = vector.load %arg10[%c0_41, %c0_42, %c0_43] : memref<1x8x128xf32, #tpu.memory_space<vmem>>, vector<1x8x128xf32>
    tpu.vector_store %arg10[%c0_41, %c0_42, %c0_43], %81 {strides = array<i32>} : memref<1x8x128xf32, #tpu.memory_space<vmem>>, vector<1x8x128xf32>,
    return
  }
  func.func @transform_0(%arg0: i32) -> (i32, i32) {
    %c0_i32 = arith.constant 0 : i32
    %c0_i32_0 = arith.constant 0 : i32
    return %arg0, %c0_i32 : i32, i32
  }
  func.func @transform_1(%arg0: i32) -> (i32, i32) {
    %c0_i32 = arith.constant 0 : i32
    %c0_i32_0 = arith.constant 0 : i32
    return %arg0, %c0_i32 : i32, i32
  }
  func.func @transform_2(%arg0: i32) -> (i32, i32) {
    %c0_i32 = arith.constant 0 : i32
    %c0_i32_0 = arith.constant 0 : i32
    %c0_i32_1 = arith.constant 0 : i32
    return %c0_i32, %c0_i32_0 : i32, i32
  }
  func.func @transform_3(%arg0: i32) -> (i32, i32) {
    %c0_i32 = arith.constant 0 : i32
    %c0_i32_0 = arith.constant 0 : i32
    %c0_i32_1 = arith.constant 0 : i32
    return %c0_i32, %c0_i32_0 : i32, i32
  }
  func.func @transform_4(%arg0: i32) -> (i32, i32, i32) {
    %c0_i32 = arith.constant 0 : i32
    %c0_i32_0 = arith.constant 0 : i32
    %c0_i32_1 = arith.constant 0 : i32
    %c0_i32_2 = arith.constant 0 : i32
    return %c0_i32, %c0_i32_0, %c0_i32_1 : i32, i32, i32
  }
  func.func @transform_5(%arg0: i32) -> (i32, i32, i32) {
    %c0_i32 = arith.constant 0 : i32
    %c0_i32_0 = arith.constant 0 : i32
    %c0_i32_1 = arith.constant 0 : i32
    %c0_i32_2 = arith.constant 0 : i32
    return %c0_i32, %c0_i32_0, %c0_i32_1 : i32, i32, i32
  }
  func.func @transform_6(%arg0: i32) -> (i32, i32) {
    %c0_i32 = arith.constant 0 : i32
    %c0_i32_0 = arith.constant 0 : i32
    %c0_i32_1 = arith.constant 0 : i32
    return %c0_i32, %c0_i32_0 : i32, i32
  }
  func.func @transform_7(%arg0: i32) -> (i32, i32) {
    %c0_i32 = arith.constant 0 : i32
    %c0_i32_0 = arith.constant 0 : i32
    %c0_i32_1 = arith.constant 0 : i32
    return %c0_i32, %c0_i32_0 : i32, i32
  }
  func.func @transform_8(%arg0: i32) -> (i32, i32) {
    %c0_i32 = arith.constant 0 : i32
    %c0_i32_0 = arith.constant 0 : i32
    return %arg0, %c0_i32 : i32, i32
  }
  func.func @transform_9(%arg0: i32) -> (i32, i32, i32) {
    %c0_i32 = arith.constant 0 : i32
    %c0_i32_0 = arith.constant 0 : i32
    %c0_i32_1 = arith.constant 0 : i32
    return %arg0, %c0_i32, %c0_i32_0 : i32, i32, i32
  }
}

</mosaic_0001>

<bundles_post_ra>
// kernel: tpu_custom_call.1
= control target key start
LH: loop header
LB: loop body
LE: loop exit
PB: predicated region body
PF: predicated region fallthrough
CT: control target
= control target key end

     0   :  { %s481_s0 = inlined_call_operand.vmem [shape: f32[8,32], index: 0, kind: input, shape index: {}]   ;;  %s482_s1 = inlined_call_operand.vmem [shape: f32[8,1], index: 1, kind: input, shape index: {}]   ;;  %s483_s2 = inlined_call_operand.vmem [shape: f32[1,32], index: 2, kind: input, shape index: {}]   ;;  %s484_s3 = inlined_call_operand.vmem [shape: f32[1,32], index: 3, kind: input, shape index: {}]   ;;  %s485_s4 = inlined_call_operand.hbm [shape: bf16[2,32,32], index: 4, kind: input, shape index: {}]   ;;  %s486_s5 = inlined_call_operand.vmem [shape: f32[2,1,32], index: 5, kind: input, shape index: {}]   ;;  %s487_s6 = inlined_call_operand.vmem [shape: f32[1,32], index: 6, kind: input, shape index: {}]   ;;  %s488_s7 = inlined_call_operand.<no memory space> [shape: f32[1,1], index: 7, kind: input, shape index: {}]   ;;  %s489_s8 = inlined_call_operand.vmem [shape: f32[8,1], index: 8, kind: output, shape index: {0}]   ;;  %s490_s9 = inlined_call_operand.hbm [shape: f32[1,8,128], index: 9, kind: output, shape index: {1}]  }
   0x1   :  { %v15_v0 = vstv %s488_s7 }
   0x2   :  { %16 = vst [vmem:[#allocation2] sm:$0x1] %v15_v0 }
   0x3   :  { %17 = vsyncpa [#allocation4], 0 }
   0x4   :  { %18 = vsyncpa [#allocation5], 0  ;;  %s387_s11 = smov [#allocation3]  }
   0x5   :  { %s32_s12 = sshll.u32 %s387_s11, 4  ;;  %s33_s12 = int_to_ptr.vmem [resolvable:$true] %s32_s12 }
   0x6   :  { %s351_s13 = scalar_lea.vmem %s33_s12, 512  ;;  %p356_p1 = scmp.lt.s32.totalorder %s33_s12, %s33_s12 }
   0x7   :  { %p352_p0 = scmp.ne.s32.totalorder %s33_s12, %s351_s13  ;;  %p357_p2 = scmp.lt.s32.totalorder %s351_s13, %s351_s13 }
   0x9   :  { %p358_p3 = por %p357_p2, %p356_p1 }
   0xb   :  { %p359_p4 = pnand %p358_p3, %p352_p0 }
   0xd   :  { %362 = shalt.err (!%p359_p4)
}
   0xe   :  { %s388_s14 = smov 64   ;;  %s389_s15 = smov 4  }
   0xf   :  { %38 = dma.hbm_to_vmem [thread:$0]  %s485_s4, 512, %s33_s12, [#allocation4], %s388_s14, %s388_s14, %s389_s15  }
  0x10   :  { %383 = dma.done.wait [#allocation4], 512  }
  0x11   :  { %384 = vsyncadd [#allocation4], 4294966784  ;;  %vm50_vm0 = vcmask 261120   ;;  %v49_v1 = vld [vmem:[%s481_s0] sm:$0xff]  ;;  %v333_v8 = vld [vmem:[#allocation3 + $0x8] sm:$0xff]   ;;  %v390_v9 = vmov 0.0  }
  0x12   :  { %v51_v2 = vsel %vm50_vm0, %v49_v1, 0.0  ;;  %309 = vmatprep.subr.bf16.mxu0 %v390_v9  ;;  %vm391_vm1 = vmmov 0   ;;  %v334_v10 = vld [vmem:[#allocation3] sm:$0xff]   ;;  %317 = vmatprep.subr.bf16.mxu1 %v390_v9  ;;  %v290_v15 = vld [vmem:[%s483_s2] ss:$0 sm:$0xff]  ;;  %v336_v22 = vld [vmem:[#allocation3 + $0x10] sm:$0xff]  }
  0x13   :  { %52 = vadd.xlane.f32.xlu0 %v51_v2  ;;  %313 = vmatprep.mubr.msk.bf16.mxu0 %vm391_vm1, %v390_v9  ;;  %v291_v17 = vld [vmem:[%s484_s3] ss:$0 sm:$0xff]  ;;  %v297_v35 = vld [vmem:[%s486_s5 + $0x1] ss:$0 sm:$0xff]  ;;  %vm246_vm2 = vcmask 7168  }
  0x14   :  { %310 = vmatpush3.bf16.msra.mxu0 %v333_v8  ;;  %321 = vmatprep.mubr.msk.bf16.mxu1 %vm391_vm1, %v390_v9  ;;  %v335_v21 = vld [vmem:[#allocation3 + $0x18] sm:$0xff]  }
  0x15   :  { %311 = vmatprep.subr.bf16.mxu0 %v390_v9  ;;  %318 = vmatpush3.bf16.msra.mxu1 %v335_v21  ;;  %v292_v23 = vld [vmem:[%s486_s5] ss:$0 sm:$0xff] }
  0x16   :  { %319 = vmatprep.subr.bf16.mxu1 %v390_v9  ;;  %v301_v45 = vld [vmem:[%s487_s6] ss:$0 sm:$0xff] }
  0x17   :  { %v302_v49 = vld [vmem:[#allocation2] ss:$0 sm:$0xff] }
  0x18   :  { %312 = vmatpush3.bf16.msra.mxu0 %v334_v10  ;;  %v254_v50 = vld [vmem:[%s482_s1] sm:$0xff]  ;;  %s392_s1 = smov [#allocation6]  }
  0x19   :  { %320 = vmatpush3.bf16.msra.mxu1 %v336_v22  ;;  %s279_s6 = sshll.u32 %s392_s1, 4  ;;  %s280_s6 = int_to_ptr.vmem [resolvable:$true] %s279_s6 }
  0x1a   :  { %s363_s29 = scalar_lea.vmem %s280_s6, 128  ;;  %p368_p6 = scmp.lt.s32.totalorder %s280_s6, %s280_s6 }
  0x1b   :  { %p364_p5 = scmp.ne.s32.totalorder %s280_s6, %s363_s29  ;;  %p369_p7 = scmp.lt.s32.totalorder %s363_s29, %s363_s29 }
  0x1d   :  { %p370_p8 = por %p369_p7, %p368_p6 }
  0x1f   :  { %p371_p9 = pnand %p370_p8, %p364_p5 }
  0x9c   :  { %v53_v3 = vpop.xlane.xlu0 %52 }
  0x9d   :  { %v55_v4 = vmul.f32 0.03125, %v53_v3 }
  0x9f   :  { %v56_v5 = vsub.f32 %v49_v1, %v55_v4 }
  0xa1   :  { %v57_v6 = vmul.f32 %v56_v5, %v56_v5 }
  0xa3   :  { %v58_v7 = vsel %vm50_vm0, %v57_v6, 0.0 }
  0xa4   :  { %59 = vadd.xlane.f32.xlu0 %v58_v7 }
 0x12d   :  { %v60_v11 = vpop.xlane.xlu0 %59 }
 0x12e   :  { %v61_v12 = vmul.f32 0.03125, %v60_v11 }
 0x130   :  { %v62_v13 = vadd.f32 1e-05, %v61_v12 }
 0x132   :  { %337 = vrsqrt.f32 %v62_v13 }
 0x13f   :  { %v338_v14 = vpop.eup %337 }
 0x140   :  { %v64_v16 = vmul.f32 %v338_v14, %v56_v5 }
 0x142   :  { %v72_v18 = vmul.f32 %v290_v15, %v64_v16 }
 0x144   :  { %v80_v19 = vadd.f32 %v291_v17, %v72_v18 }
 0x146   :  { %v86_v20 = vpack.c.bf16 %v80_v19, %v80_v19 }
 0x148   :  { %314 = vmatmul.mubr.msk.bf16.vlgmr.msra.gmra.mxu0 %vm50_vm0, %v86_v20 }
 0x208   :  { %v142_v24 = vpop.f32.mrf.mxu0 }
 0x209   :  { %v143_v25 = vadd.f32 %v292_v23, %v142_v24 }
 0x20a   :  { %v315_v26 = vpop.f32.mrf.mxu0 }
 0x20b   :  { %v149_v27 = vmul.f32 0.70710677, %v143_v25  ;;  %v148_v31 = vmul.f32 0.5, %v143_v25 }
 0x20c   :  { %v145_v28 = vpop.f32.mrf.mxu0 }
 0x20d   :  { %339 = verf.f32 %v149_v27 }
 0x20e   :  { %v316_v29 = vpop.f32.mrf.mxu0 }
 0x21a   :  { %v340_v30 = vpop.eup %339 }
 0x21b   :  { %v151_v32 = vadd.f32 1.0, %v340_v30 }
 0x21d   :  { %v152_v33 = vmul.f32 %v151_v32, %v148_v31 }
 0x21f   :  { %v160_v34 = vpack.c.bf16 %v152_v33, %v152_v33 }
 0x221   :  { %322 = vmatmul.mubr.msk.bf16.vlgmr.msra.gmra.mxu1 %vm50_vm0, %v160_v34 }
 0x2e1   :  { %v216_v36 = vpop.f32.mrf.mxu1 }
 0x2e2   :  { %v217_v37 = vadd.f32 %v297_v35, %v216_v36 }
 0x2e3   :  { %v323_v38 = vpop.f32.mrf.mxu1 }
 0x2e4   :  { %v223_v39 = vmul.f32 0.70710677, %v217_v37  ;;  %v222_v43 = vmul.f32 0.5, %v217_v37 }
 0x2e5   :  { %v219_v40 = vpop.f32.mrf.mxu1 }
 0x2e6   :  { %341 = verf.f32 %v223_v39 }
 0x2e7   :  { %v324_v41 = vpop.f32.mrf.mxu1 }
 0x2f3   :  { %v342_v42 = vpop.eup %341 }
 0x2f4   :  { %v225_v44 = vadd.f32 1.0, %v342_v42 }
 0x2f6   :  { %v226_v46 = vmul.f32 %v225_v44, %v222_v43 }
 0x2f8   :  { %v234_v47 = vmul.f32 %v301_v45, %v226_v46 }
 0x2fa   :  { %v235_v48 = vsel %vm50_vm0, %v234_v47, 0.0 }
 0x2fb   :  { %236 = vadd.xlane.f32.xlu1 %v235_v48 }
 0x384   :  { %v237_v51 = vpop.xlane.xlu1 %236 }
 0x385   :  { %v245_v52 = vadd.f32 %v302_v49, %v237_v51 }
 0x387   :  { %v255_v53 = vsub.f32 %v245_v52, %v254_v50  ;;  %247 = vst.msk [vmem:[%s489_s8] sm:$0xff] %vm246_vm2, %v245_v52 }
 0x389   :  { %v256_v54 = vmul.f32 %v255_v53, %v255_v53 }
 0x38b   :  { %v258_v55 = vsel %vm246_vm2, %v256_v54, 0.0 }
 0x38c   :  { %259 = vadd.xlane.f32.xlu1 %v258_v55 }
 0x415   :  { %v260_v56 = vpop.xlane.xlu1 %259 }
 0x416   :  { %v261_v57 = vrot.slane %v260_v56, 4 }
 0x418   :  { %v262_v58 = vadd.f32 %v261_v57, %v260_v56 }
 0x41a   :  { %v263_v59 = vrot.slane %v262_v58, 2 }
 0x41c   :  { %v264_v60 = vadd.f32 %v263_v59, %v262_v58 }
 0x41e   :  { %v265_v61 = vrot.slane %v264_v60, 1 }
 0x420   :  { %v266_v62 = vadd.f32 %v265_v61, %v264_v60 }
 0x422   :  { %325 = vpush %v266_v62 }
 0x453   :  { %s326_s28 = spop %325 }
 0x454   :  { %v268_v63 = vstv %s326_s28 }
 0x455   :  { %270 = vst [vmem:[#allocation6] sm:$0xff] %v268_v63 }
 0x456   :  { %374 = shalt.err (!%p371_p9)
}
 0x457   :  { %282 = dma.vmem_to_hbm [thread:$0]  %s280_s6, 128, %s490_s9, [#allocation5]  }
 0x458   :  { %385 = dma.done.wait [#allocation5], 128  }
 0x459   :  { %386 = vsyncadd [#allocation5], 4294967168 }
 0x45a   :  { %288 = vsyncpa [#allocation4], 1 }
 0x45b   :  { %289 = vsyncpa [#allocation5], 1 }

</bundles_post_ra>
